<compile_context>
chip_gen: v7x
topology: tpu7x:2x2x1
jax: 0.10.0
libtpu: 0.0.40
codegen_flags: <defaults>
</compile_context>

<pallas_src>
import jax
import jax.numpy as jnp
from jax.experimental import pallas as pl
from jax.experimental.pallas import tpu as pltpu


def _round_up(x: int, m: int) -> int:
    return ((x + m - 1) // m) * m


def _vmem_capacity_bytes() -> int:
    try:
        return int(pltpu.get_tpu_info().vmem_capacity_bytes)
    except Exception:
        return 64 * 1024 * 1024  # conservative per-TC fallback (v7x class)


def _resident_spec(shape):
    """Grid-invariant block: always block (0, 0), single pipeline buffer."""
    index_map = lambda i: (0,) * len(shape)
    try:
        return pl.BlockSpec(shape, index_map, pipeline_mode=pl.Buffered(1))
    except TypeError:  # older jax without pipeline_mode: fall back to default buffering
        return pl.BlockSpec(shape, index_map)


def timestep_embedding_kernel(x_ref, w1_ref, b1_ref, w2_ref, b2_ref, o_ref):
    # linear_1: (TB, D_in) @ (D_in, D_emb) + (1, D_emb); MXU accumulates in f32.
    x = x_ref[...].astype(w1_ref.dtype)
    h = jnp.dot(x, w1_ref[...], preferred_element_type=jnp.float32)
    h = h + b1_ref[...].astype(jnp.float32)

    # SiLU in f32 with a single EUP op per element (exact: h*sigmoid(h)).
    h = 0.5 * h * (1.0 + jnp.tanh(0.5 * h))

    # linear_2: cast activation to the weight dtype (bf16-friendly), keep f32 accumulation.
    out = jnp.dot(h.astype(w2_ref.dtype), w2_ref[...],
                  preferred_element_type=jnp.float32)
    out = out + b2_ref[...].astype(jnp.float32)
    o_ref[...] = out.astype(o_ref.dtype)


def timestep_embedding(sample, w1, b1, w2, b2, *, block_b: int = 512):
    """Fused TimestepEmbedding forward.

    sample: [B, D_in]
    w1:     [D_in, D_emb]  (transposed PyTorch linear_1.weight; f32 or bf16)
    b1:     [D_emb]
    w2:     [D_emb, D_out] (transposed PyTorch linear_2.weight; f32 or bf16)
    b2:     [D_out]
    returns [B, D_out] in sample.dtype
    """
    B, D_in = sample.shape
    D_in_w, D_emb = w1.shape
    D_emb_w, D_out = w2.shape
    assert D_in_w == D_in and D_emb_w == D_emb
    assert b1.shape == (D_emb,) and b2.shape == (D_out,)

    # ---- lane-pad D_in to a multiple of 128 (zeros => identical math) -----------------
    D_in_p = _round_up(D_in, 128)
    if D_in_p != D_in:
        sample = jnp.pad(sample, ((0, 0), (0, D_in_p - D_in)))
        w1 = jnp.pad(w1, ((0, D_in_p - D_in), (0, 0)))
        D_in = D_in_p

    # Keep biases 2-D so the last-two-dims layout rules are satisfied.
    b1_2d = b1.reshape(1, D_emb)
    b2_2d = b2.reshape(1, D_out)

    act_itemsize = jnp.dtype(sample.dtype).itemsize
    # Sublane packing of the I/O dtype: 8 for 32-bit, 16 for 16-bit, 32 for 8-bit.
    sublane = {4: 8, 2: 16, 1: 32}.get(act_itemsize, 8)

    # ---- batch tile selection (tile only over B; keep D_out whole => lane-dense vst) --
    tb = max(sublane, min(block_b, _round_up(B, sublane)))
    tb = _round_up(tb, sublane)

    # Weights/biases are single-buffered (Buffered(1)); x/out are double-buffered.
    w_bytes = (w1.size * w1.dtype.itemsize + b1.size * b1.dtype.itemsize
               + w2.size * w2.dtype.itemsize + b2.size * b2.dtype.itemsize)

    def _vmem_estimate(tb_):
        x_bytes = 2 * tb_ * D_in * act_itemsize       # double-buffered input tile
        o_bytes = 2 * tb_ * D_out * act_itemsize      # double-buffered output tile
        live_f32 = tb_ * (D_emb + D_out) * 4          # f32 intermediates in vregs/VMEM
        return w_bytes + x_bytes + o_bytes + live_f32

    # VMEM policy per generation: big budget on 128 MiB parts (v5e/v6e), tight on v7x.
    capacity = _vmem_capacity_bytes()
    if capacity >= 96 * 1024 * 1024:
        vmem_budget = 96 * 1024 * 1024
        vmem_limit_cap = 100 * 1024 * 1024
    else:
        vmem_budget = 30 * 1024 * 1024
        vmem_limit_cap = 48 * 1024 * 1024

    while tb > sublane and _vmem_estimate(tb) > vmem_budget:
        tb = max(sublane, _round_up(tb // 2, sublane))

    grid = (pl.cdiv(B, tb),)

    # Only shard across TCs when there are actually >= 2 batch tiles; otherwise a
    # "parallel" axis would just duplicate the resident-weight DMA on v7x.
    dim_semantics = ("parallel",) if grid[0] >= 2 else ("arbitrary",)

    vmem_limit = int(min(max(int(1.5 * _vmem_estimate(tb)), 16 * 1024 * 1024),
                         vmem_limit_cap))

    # ---- cost estimate so XLA can overlap this (tiny) call with neighbors --------------
    cost = pl.CostEstimate(
        flops=2 * B * (D_in * D_emb + D_emb * D_out),
        transcendentals=B * D_emb,  # one tanh per hidden element
        bytes_accessed=(B * D_in * act_itemsize
                        + w_bytes
                        + B * D_out * act_itemsize),
    )

    return pl.pallas_call(
        timestep_embedding_kernel,
        out_shape=jax.ShapeDtypeStruct((B, D_out), sample.dtype),
        grid=grid,
        in_specs=[
            # x tiles over rows; weights/biases are grid-invariant, single-buffered.
            pl.BlockSpec((tb, D_in), lambda i: (i, 0)),
            _resident_spec((D_in, D_emb)),
            _resident_spec((1, D_emb)),
            _resident_spec((D_emb, D_out)),
            _resident_spec((1, D_out)),
        ],
        out_specs=pl.BlockSpec((tb, D_out), lambda i: (i, 0)),
        compiler_params=pltpu.CompilerParams(
            dimension_semantics=dim_semantics,
            vmem_limit_bytes=vmem_limit,
        ),
        cost_estimate=cost,
    )(sample, w1, b1_2d, w2, b2_2d)


def _ref_forward(sample, w1, b1, w2, b2):
    h = jnp.dot(sample, w1, precision=jax.lax.Precision.HIGHEST) + b1
    h = h * jax.nn.sigmoid(h)
    return jnp.dot(h, w2, precision=jax.lax.Precision.HIGHEST) + b2


if __name__ == "__main__":
    # Small shapes consistent with the module:
    #   timestep_input_dim=32, time_embed_dim=128, out_dim defaults to time_embed_dim.
    B, D_in, D_emb = 8, 32, 128
    D_out = D_emb

    key = jax.random.PRNGKey(0)
    k_x, k_w1, k_b1, k_w2, k_b2 = jax.random.split(key, 5)

    # Deterministic parameter init (PyTorch-Linear-like uniform bounds).
    bound1 = 1.0 / (D_in ** 0.5)
    bound2 = 1.0 / (D_emb ** 0.5)
    sample = jax.random.normal(k_x, (B, D_in), dtype=jnp.float32)
    w1 = jax.random.uniform(k_w1, (D_in, D_emb), jnp.float32, -bound1, bound1)
    b1 = jax.random.uniform(k_b1, (D_emb,), jnp.float32, -bound1, bound1)
    w2 = jax.random.uniform(k_w2, (D_emb, D_out), jnp.float32, -bound2, bound2)
    b2 = jax.random.uniform(k_b2, (D_out,), jnp.float32, -bound2, bound2)

    out = timestep_embedding(sample, w1, b1, w2, b2)
    out = jax.block_until_ready(out)

    ref = _ref_forward(sample, w1, b1, w2, b2)
    assert out.shape == (B, D_out)
    max_err = float(jnp.max(jnp.abs(out - ref)))
    assert jnp.allclose(out, ref, atol=2e-3, rtol=2e-3), f"max abs err {max_err}"

    print("KERNEL_OK")
</pallas_src>

<mosaic_0001>
module attributes {stable_mosaic.version = 11 : i64} {
  func.func @timestep_embedding_kernel(%arg0: i32, %arg1: memref<8x128xf32, #tpu.memory_space<vmem>>, %arg2: memref<128x128xf32, #tpu.memory_space<vmem>>, %arg3: memref<1x128xf32, #tpu.memory_space<vmem>>, %arg4: memref<128x128xf32, #tpu.memory_space<vmem>>, %arg5: memref<1x128xf32, #tpu.memory_space<vmem>>, %arg6: memref<8x128xf32, #tpu.memory_space<vmem>>) attributes {dimension_semantics = [#tpu.dimension_semantics<arbitrary>], iteration_bounds = array<i64: 1>, scalar_prefetch = 0 : i64, scratch_operands = 0 : i64, tpu.core_type = #tpu.core_type<tc>, window_params = [{transform_indices = @transform_0, window_bounds = array<i64: 8, 128>}, {pipeline_mode = #tpu.pipeline_mode<synchronous>, transform_indices = @transform_1, window_bounds = array<i64: 128, 128>}, {pipeline_mode = #tpu.pipeline_mode<synchronous>, transform_indices = @transform_2, window_bounds = array<i64: 1, 128>}, {pipeline_mode = #tpu.pipeline_mode<synchronous>, transform_indices = @transform_3, window_bounds = array<i64: 128, 128>}, {pipeline_mode = #tpu.pipeline_mode<synchronous>, transform_indices = @transform_4, window_bounds = array<i64: 1, 128>}, {transform_indices = @transform_5, window_bounds = array<i64: 8, 128>}]} {
    %c0 = arith.constant 0 : index
    %c0_0 = arith.constant 0 : index
    %0 = vector.load %arg1[%c0, %c0_0] : memref<8x128xf32, #tpu.memory_space<vmem>>, vector<8x128xf32>
    %c0_1 = arith.constant 0 : index
    %c0_2 = arith.constant 0 : index
    %1 = vector.load %arg2[%c0_1, %c0_2] : memref<128x128xf32, #tpu.memory_space<vmem>>, vector<128x128xf32>
    %cst = arith.constant dense<0.000000e+00> : vector<8x128xf32>
    %2 = tpu.matmul %0, %1, %cst {dimension_numbers = #tpu.dot_dimension_numbers<[1], [0], [0], [1], [0, 0, 1, 1], [], []>} : vector<8x128xf32>, vector<128x128xf32>, vector<8x128xf32> -> vector<8x128xf32>
    %c0_3 = arith.constant 0 : index
    %c0_4 = arith.constant 0 : index
    %3 = vector.load %arg3[%c0_3, %c0_4] : memref<1x128xf32, #tpu.memory_space<vmem>>, vector<1x128xf32>
    %4 = vector.broadcast %3 : vector<1x128xf32> to vector<8x128xf32>
    %5 = arith.addf %2, %4 : vector<8x128xf32>
    %cst_5 = arith.constant 5.000000e-01 : f32
    %6 = vector.broadcast %cst_5 : f32 to vector<8x128xf32>
    %7 = arith.mulf %6, %5 : vector<8x128xf32>
    %cst_6 = arith.constant 5.000000e-01 : f32
    %8 = vector.broadcast %cst_6 : f32 to vector<8x128xf32>
    %9 = arith.mulf %8, %5 : vector<8x128xf32>
    %10 = math.tanh %9 : vector<8x128xf32>
    %cst_7 = arith.constant 1.000000e+00 : f32
    %11 = vector.broadcast %cst_7 : f32 to vector<8x128xf32>
    %12 = arith.addf %11, %10 : vector<8x128xf32>
    %13 = arith.mulf %7, %12 : vector<8x128xf32>
    %c0_8 = arith.constant 0 : index
    %c0_9 = arith.constant 0 : index
    %14 = vector.load %arg4[%c0_8, %c0_9] : memref<128x128xf32, #tpu.memory_space<vmem>>, vector<128x128xf32>
    %cst_10 = arith.constant dense<0.000000e+00> : vector<8x128xf32>
    %15 = tpu.matmul %13, %14, %cst_10 {dimension_numbers = #tpu.dot_dimension_numbers<[1], [0], [0], [1], [0, 0, 1, 1], [], []>} : vector<8x128xf32>, vector<128x128xf32>, vector<8x128xf32> -> vector<8x128xf32>
    %c0_11 = arith.constant 0 : index
    %c0_12 = arith.constant 0 : index
    %16 = vector.load %arg5[%c0_11, %c0_12] : memref<1x128xf32, #tpu.memory_space<vmem>>, vector<1x128xf32>
    %17 = vector.broadcast %16 : vector<1x128xf32> to vector<8x128xf32>
    %18 = arith.addf %15, %17 : vector<8x128xf32>
    %c0_13 = arith.constant 0 : index
    %c0_14 = arith.constant 0 : index
    %19 = vector.load %arg6[%c0_13, %c0_14] : memref<8x128xf32, #tpu.memory_space<vmem>>, vector<8x128xf32>
    tpu.vector_store %arg6[%c0_13, %c0_14], %18 {strides = array<i32>} : memref<8x128xf32, #tpu.memory_space<vmem>>, vector<8x128xf32>,
    return
  }
  func.func @transform_0(%arg0: i32) -> (i32, i32) {
    %c0_i32 = arith.constant 0 : i32
    %c0_i32_0 = arith.constant 0 : i32
    return %arg0, %c0_i32 : i32, i32
  }
  func.func @transform_1(%arg0: i32) -> (i32, i32) {
    %c0_i32 = arith.constant 0 : i32
    %c0_i32_0 = arith.constant 0 : i32
    %c0_i32_1 = arith.constant 0 : i32
    return %c0_i32, %c0_i32_0 : i32, i32
  }
  func.func @transform_2(%arg0: i32) -> (i32, i32) {
    %c0_i32 = arith.constant 0 : i32
    %c0_i32_0 = arith.constant 0 : i32
    %c0_i32_1 = arith.constant 0 : i32
    return %c0_i32, %c0_i32_0 : i32, i32
  }
  func.func @transform_3(%arg0: i32) -> (i32, i32) {
    %c0_i32 = arith.constant 0 : i32
    %c0_i32_0 = arith.constant 0 : i32
    %c0_i32_1 = arith.constant 0 : i32
    return %c0_i32, %c0_i32_0 : i32, i32
  }
  func.func @transform_4(%arg0: i32) -> (i32, i32) {
    %c0_i32 = arith.constant 0 : i32
    %c0_i32_0 = arith.constant 0 : i32
    %c0_i32_1 = arith.constant 0 : i32
    return %c0_i32, %c0_i32_0 : i32, i32
  }
  func.func @transform_5(%arg0: i32) -> (i32, i32) {
    %c0_i32 = arith.constant 0 : i32
    %c0_i32_0 = arith.constant 0 : i32
    return %arg0, %c0_i32 : i32, i32
  }
}

</mosaic_0001>

<bundles_post_ra>
// kernel: tpu_custom_call.1
= control target key start
LH: loop header
LB: loop body
LE: loop exit
PB: predicated region body
PF: predicated region fallthrough
CT: control target
= control target key end

     0   :  { %10 = vsyncpa [#allocation3], 0  ;;  %s642_s0 = inlined_call_operand.hbm [shape: f32[8,128], index: 0, kind: input, shape index: {}]   ;;  %s643_s1 = inlined_call_operand.hbm [shape: f32[128,128], index: 1, kind: input, shape index: {}]   ;;  %s644_s2 = inlined_call_operand.vmem [shape: f32[1,128], index: 2, kind: input, shape index: {}]   ;;  %s645_s3 = inlined_call_operand.hbm [shape: f32[128,128], index: 3, kind: input, shape index: {}]   ;;  %s646_s4 = inlined_call_operand.vmem [shape: f32[1,128], index: 4, kind: input, shape index: {}]   ;;  %s647_s5 = inlined_call_operand.hbm [shape: f32[8,128], index: 5, kind: output, shape index: {}]  }
   0x1   :  { %11 = vsyncpa [#allocation6], 0 }
   0x2   :  { %12 = vsyncpa [#allocation4], 0  ;;  %s527_s18 = smov [#allocation5]   ;;  %s433_s22 = scalar_lea.hbm %s643_s1, 2048 }
   0x3   :  { %s28_s19 = sshll.u32 %s527_s18, 4  ;;  %p434_p0 = scmp.ne.s32.totalorder %s643_s1, %s433_s22  ;;  %s29_s19 = int_to_ptr.vmem [resolvable:$true] %s28_s19 }
   0x4   :  { %p437_p1 = scmp.lt.u32.totalorder %s433_s22, %s643_s1 }
   0x6   :  { %p439_p2 = pnand %p437_p1, %p434_p0 }
   0x8   :  { %442 = shalt.err (!%p439_p2)
}
   0x9   :  { %s443_s27 = scalar_lea.vmem %s29_s19, 2048  ;;  %p448_p4 = scmp.lt.s32.totalorder %s29_s19, %s29_s19 }
   0xa   :  { %p444_p3 = scmp.ne.s32.totalorder %s29_s19, %s443_s27  ;;  %p449_p5 = scmp.lt.s32.totalorder %s443_s27, %s443_s27 }
   0xc   :  { %p450_p6 = por %p449_p5, %p448_p4 }
   0xe   :  { %p451_p7 = pnand %p450_p6, %p444_p3 }
  0x10   :  { %454 = shalt.err (!%p451_p7)
}
  0x11   :  { %s528_s28 = smov 128   ;;  %s529_s29 = smov 8  }
  0x12   :  { %34 = dma.hbm_to_vmem [thread:$0]  %s643_s1, 2048, %s29_s19, [#allocation6], %s528_s28, %s528_s28, %s529_s29  }
  0x13   :  { %s530_s7 = smov [#allocation2]   ;;  %s531_s9 = smov [#allocation7]  }
  0x14   :  { %s19_s8 = sshll.u32 %s530_s7, 4  ;;  %s42_s10 = sshll.u32 %s531_s9, 4  ;;  %s20_s8 = int_to_ptr.vmem [resolvable:$true] %s19_s8  ;;  %s43_s10 = int_to_ptr.vmem [resolvable:$true] %s42_s10 }
  0x15   :  { %s455_s13 = scalar_lea.hbm %s642_s0, 128 }
  0x16   :  { %p456_p8 = scmp.ne.s32.totalorder %s642_s0, %s455_s13  ;;  %p459_p9 = scmp.lt.u32.totalorder %s455_s13, %s642_s0 }
  0x18   :  { %p461_p10 = pnand %p459_p9, %p456_p8 }
  0x1a   :  { %464 = shalt.err (!%p461_p10)
}
  0x1b   :  { %s465_s1 = scalar_lea.vmem %s20_s8, 128  ;;  %p470_p12 = scmp.lt.s32.totalorder %s20_s8, %s20_s8 }
  0x1c   :  { %p466_p11 = scmp.ne.s32.totalorder %s20_s8, %s465_s1  ;;  %p471_p13 = scmp.lt.s32.totalorder %s465_s1, %s465_s1 }
  0x1e   :  { %p472_p0 = por %p471_p13, %p470_p12 }
  0x20   :  { %p473_p1 = pnand %p472_p0, %p466_p11 }
  0x22   :  { %476 = shalt.err (!%p473_p1)
}
  0x23   :  { %22 = dma.hbm_to_vmem [thread:$0]  %s642_s0, 128, %s20_s8, [#allocation3]  }
  0x24   :  { %s477_s22 = scalar_lea.hbm %s645_s3, 2048 }
  0x25   :  { %p478_p2 = scmp.ne.s32.totalorder %s645_s3, %s477_s22  ;;  %p481_p3 = scmp.lt.u32.totalorder %s477_s22, %s645_s3 }
  0x27   :  { %p483_p4 = pnand %p481_p3, %p478_p2 }
  0x29   :  { %486 = shalt.err (!%p483_p4)
}
  0x2a   :  { %s487_s27 = scalar_lea.vmem %s43_s10, 2048  ;;  %p492_p6 = scmp.lt.s32.totalorder %s43_s10, %s43_s10 }
  0x2b   :  { %p488_p5 = scmp.ne.s32.totalorder %s43_s10, %s487_s27  ;;  %p493_p7 = scmp.lt.s32.totalorder %s487_s27, %s487_s27 }
  0x2d   :  { %p494_p8 = por %p493_p7, %p492_p6 }
  0x2f   :  { %p495_p9 = pnand %p494_p8, %p488_p5 }
  0x31   :  { %498 = shalt.err (!%p495_p9)
}
  0x32   :  { %48 = dma.hbm_to_vmem [thread:$0]  %s645_s3, 2048, %s43_s10, [#allocation6], %s528_s28, %s528_s28, %s529_s29  }
  0x33   :  { %521 = dma.done.wait [#allocation3], 128  }
  0x34   :  { %522 = vsyncadd [#allocation3], 4294967168 }
  0x35   :  { %523 = dma.done.wait [#allocation6], 4096  }
  0x36   :  { %524 = vsyncadd [#allocation6], 4294963200  ;;  %v532_v0 = vmov 0.0|0.0   ;;  %vm533_vm0 = vmmov 0   ;;  %v534_v1 = vmov 0.0   ;;  %v61_v2 = vld [vmem:[#allocation5] sm:$0xff] }
  0x37   :  { %374 = vmatprep.subr.bf16.mxu0 %v532_v0  ;;  %336 = vmatprep.mubr.msk.f32.mxu0 %vm533_vm0, %v534_v1  ;;  %v62_v3 = vld [vmem:[#allocation5 + $0x8] sm:$0xff]  ;;  %v63_v4 = vld [vmem:[#allocation5 + $0x10] sm:$0xff]  ;;  %v64_v6 = vld [vmem:[#allocation5 + $0x18] sm:$0xff]  ;;  %s535_s7 = smov [#allocation8]  }
  0x38   :  { %398 = vmatprep.subr.bf16.mxu1 %v532_v0  ;;  %371 = vmatprep.mubr.msk.f32.mxu1 %vm533_vm0, %v534_v1  ;;  %v375_v5 = vpack.c.bf16 %v62_v3, %v61_v2  ;;  %v378_v7 = vpack.c.bf16 %v64_v6, %v63_v4  ;;  %v65_v8 = vld [vmem:[#allocation5 + $0x20] sm:$0xff]  ;;  %v66_v9 = vld [vmem:[#allocation5 + $0x28] sm:$0xff]  ;;  %v160_v12 = vld [vmem:[#allocation7 + $0x10] sm:$0xff]  ;;  %s258_s8 = sshll.u32 %s535_s7, 4  ;;  %s259_s8 = int_to_ptr.vmem [resolvable:$true] %s258_s8 }
  0x39   :  { %v158_v10 = vld [vmem:[#allocation7] sm:$0xff]  ;;  %v159_v11 = vld [vmem:[#allocation7 + $0x8] sm:$0xff]  ;;  %v161_v13 = vld [vmem:[#allocation7 + $0x18] sm:$0xff]  ;;  %v381_v14 = vpack.c.bf16 %v66_v9, %v65_v8  ;;  %p504_p11 = scmp.lt.s32.totalorder %s259_s8, %s259_s8 }
  0x3a   :  { %376 = vmatpush3.bf16.msra.mxu0 %v375_v5  ;;  %v399_v15 = vpack.c.bf16 %v159_v11, %v158_v10  ;;  %v67_v16 = vld [vmem:[#allocation5 + $0x30] sm:$0xff]  ;;  %v68_v17 = vld [vmem:[#allocation5 + $0x38] sm:$0xff]  ;;  %v402_v18 = vpack.c.bf16 %v161_v13, %v160_v12  ;;  %v162_v19 = vld [vmem:[#allocation7 + $0x20] sm:$0xff] }
  0x3b   :  { %377 = vmatprep.subr.bf16.mxu0 %v532_v0  ;;  %v163_v20 = vld [vmem:[#allocation7 + $0x28] sm:$0xff]  ;;  %v384_v21 = vpack.c.bf16 %v68_v17, %v67_v16  ;;  %v69_v22 = vld [vmem:[#allocation5 + $0x40] sm:$0xff]  ;;  %v71_v26 = vld [vmem:[#allocation5 + $0x50] sm:$0xff] }
  0x3c   :  { %400 = vmatpush3.bf16.msra.mxu1 %v399_v15  ;;  %v70_v23 = vld [vmem:[#allocation5 + $0x48] sm:$0xff]  ;;  %v405_v24 = vpack.c.bf16 %v163_v20, %v162_v19  ;;  %v72_v27 = vld [vmem:[#allocation5 + $0x58] sm:$0xff]  ;;  %v73_v29 = vld [vmem:[#allocation5 + $0x60] sm:$0xff] }
  0x3d   :  { %401 = vmatprep.subr.bf16.mxu1 %v532_v0  ;;  %v387_v25 = vpack.c.bf16 %v70_v23, %v69_v22  ;;  %v390_v28 = vpack.c.bf16 %v72_v27, %v71_v26  ;;  %v74_v30 = vld [vmem:[#allocation5 + $0x68] sm:$0xff]  ;;  %v75_v32 = vld [vmem:[#allocation5 + $0x70] sm:$0xff]  ;;  %v76_v33 = vld [vmem:[#allocation5 + $0x78] sm:$0xff] }
  0x3e   :  { %379 = vmatpush3.bf16.msra.mxu0 %v378_v7  ;;  %v393_v31 = vpack.c.bf16 %v74_v30, %v73_v29  ;;  %v396_v34 = vpack.c.bf16 %v76_v33, %v75_v32  ;;  %v60_v35 = vld [vmem:[#allocation2] sm:$0xff]  ;;  %v164_v36 = vld [vmem:[#allocation7 + $0x30] sm:$0xff]  ;;  %v166_v39 = vld [vmem:[#allocation7 + $0x40] sm:$0xff] }
  0x3f   :  { %380 = vmatprep.subr.bf16.mxu0 %v532_v0  ;;  %v165_v37 = vld [vmem:[#allocation7 + $0x38] sm:$0xff]  ;;  %v167_v40 = vld [vmem:[#allocation7 + $0x48] sm:$0xff]  ;;  %v168_v42 = vld [vmem:[#allocation7 + $0x50] sm:$0xff] }
  0x40   :  { %403 = vmatpush3.bf16.msra.mxu1 %v402_v18  ;;  %v408_v38 = vpack.c.bf16 %v165_v37, %v164_v36  ;;  %v411_v41 = vpack.c.bf16 %v167_v40, %v166_v39  ;;  %v169_v43 = vld [vmem:[#allocation7 + $0x58] sm:$0xff]  ;;  %v170_v45 = vld [vmem:[#allocation7 + $0x60] sm:$0xff]  ;;  %v171_v46 = vld [vmem:[#allocation7 + $0x68] sm:$0xff] }
  0x41   :  { %404 = vmatprep.subr.bf16.mxu1 %v532_v0  ;;  %v414_v44 = vpack.c.bf16 %v169_v43, %v168_v42  ;;  %v417_v47 = vpack.c.bf16 %v171_v46, %v170_v45  ;;  %v172_v48 = vld [vmem:[#allocation7 + $0x70] sm:$0xff]  ;;  %v173_v49 = vld [vmem:[#allocation7 + $0x78] sm:$0xff] }
  0x42   :  { %382 = vmatpush3.bf16.msra.mxu0 %v381_v14  ;;  %v420_v50 = vpack.c.bf16 %v173_v49, %v172_v48  ;;  %v268_v51 = vld [vmem:[%s644_s2] ss:$0 sm:$0xff]  ;;  %s499_s2 = scalar_lea.vmem %s259_s8, 128 }
  0x43   :  { %383 = vmatprep.subr.bf16.mxu0 %v532_v0  ;;  %v269_v59 = vld [vmem:[%s646_s4] ss:$0 sm:$0xff]  ;;  %p500_p10 = scmp.ne.s32.totalorder %s259_s8, %s499_s2  ;;  %p505_p12 = scmp.lt.s32.totalorder %s499_s2, %s499_s2 }
  0x44   :  { %406 = vmatpush3.bf16.msra.mxu1 %v405_v24 }
  0x45   :  { %407 = vmatprep.subr.bf16.mxu1 %v532_v0  ;;  %p506_p13 = por %p505_p12, %p504_p11 }
  0x46   :  { %385 = vmatpush3.bf16.msra.mxu0 %v384_v21 }
  0x47   :  { %386 = vmatprep.subr.bf16.mxu0 %v532_v0  ;;  %p507_p0 = pnand %p506_p13, %p500_p10 }
  0x48   :  { %409 = vmatpush3.bf16.msra.mxu1 %v408_v38 }
  0x49   :  { %410 = vmatprep.subr.bf16.mxu1 %v532_v0 }
  0x4a   :  { %388 = vmatpush3.bf16.msra.mxu0 %v387_v25 }
  0x4b   :  { %389 = vmatprep.subr.bf16.mxu0 %v532_v0 }
  0x4c   :  { %412 = vmatpush3.bf16.msra.mxu1 %v411_v41 }
  0x4d   :  { %413 = vmatprep.subr.bf16.mxu1 %v532_v0 }
  0x4e   :  { %391 = vmatpush3.bf16.msra.mxu0 %v390_v28 }
  0x4f   :  { %392 = vmatprep.subr.bf16.mxu0 %v532_v0 }
  0x50   :  { %415 = vmatpush3.bf16.msra.mxu1 %v414_v44 }
  0x51   :  { %416 = vmatprep.subr.bf16.mxu1 %v532_v0 }
  0x52   :  { %394 = vmatpush3.bf16.msra.mxu0 %v393_v31 }
  0x53   :  { %395 = vmatprep.subr.bf16.mxu0 %v532_v0 }
  0x54   :  { %418 = vmatpush3.bf16.msra.mxu1 %v417_v47 }
  0x55   :  { %419 = vmatprep.subr.bf16.mxu1 %v532_v0 }
  0x56   :  { %397 = vmatpush3.bf16.msra.mxu0 %v396_v34 }
  0x58   :  { %421 = vmatpush3.bf16.msra.mxu1 %v420_v50 }
  0x59   :  { %337 = vmatmul.mubr.f32.vlgmr.msra.gmra.mrb[0].mxu0 %v60_v35 }
 0x12c   :  { %v150_v52 = vpop.f32.mrb[0].mxu0 }
 0x12d   :  { %v151_v53 = vadd.f32 %v268_v51, %v150_v52  ;;  %v338_v54 = vpop.f32.mrb[1].mxu0 }
 0x12f   :  { %v154_v55 = vmul.f32 0.5, %v151_v53 }
 0x131   :  { %431 = vtanh.f32 %v154_v55 }
 0x13b   :  { %v432_v56 = vpop.eup %431 }
 0x13c   :  { %v156_v57 = vadd.f32 1.0, %v432_v56 }
 0x13e   :  { %v157_v58 = vmul.f32 %v156_v57, %v154_v55 }
 0x140   :  { %372 = vmatmul.mubr.f32.vlgmr.msra.gmra.mrb[0].mxu1 %v157_v58 }
 0x213   :  { %v247_v60 = vpop.f32.mrb[0].mxu1 }
 0x214   :  { %v248_v61 = vadd.f32 %v269_v59, %v247_v60  ;;  %v373_v62 = vpop.f32.mrb[1].mxu1 }
 0x216   :  { %251 = vst [vmem:[#allocation8] sm:$0xff] %v248_v61 }
 0x217   :  { %510 = shalt.err (!%p507_p0)
}
 0x218   :  { %s511_s11 = scalar_lea.hbm %s647_s5, 128 }
 0x219   :  { %p512_p1 = scmp.ne.s32.totalorder %s647_s5, %s511_s11  ;;  %p515_p2 = scmp.lt.u32.totalorder %s511_s11, %s647_s5 }
 0x21b   :  { %p517_p3 = pnand %p515_p2, %p512_p1 }
 0x21d   :  { %520 = shalt.err (!%p517_p3)
}
 0x21e   :  { %261 = dma.vmem_to_hbm [thread:$0]  %s259_s8, 128, %s647_s5, [#allocation4]  }
 0x21f   :  { %525 = dma.done.wait [#allocation4], 128  }
 0x220   :  { %526 = vsyncadd [#allocation4], 4294967168 }
 0x221   :  { %265 = vsyncpa [#allocation3], 1 }
 0x222   :  { %266 = vsyncpa [#allocation6], 1 }
 0x223   :  { %267 = vsyncpa [#allocation4], 1 }

</bundles_post_ra>
